<compile_context>
chip_gen: v7x
topology: tpu7x:2x2x1
jax: 0.10.0
libtpu: 0.0.40
codegen_flags: <defaults>
</compile_context>

<pallas_src>
import jax
import jax.numpy as jnp
from jax.experimental import pallas as pl
from jax.experimental.pallas import tpu as pltpu

_LANE = 128     # vreg lane width (last dim)
_SUBLANE = 8    # vreg sublane count (second-to-last dim)


def _round_up(n, m):
    return ((n + m - 1) // m) * m


def _tpu_vmem_and_cores():
    """Best-effort chip query; conservative (v7x-safe) fallbacks."""
    vmem_bytes = 64 << 20   # v7x per-TensorCore VMEM; safe lower bound everywhere
    num_cores = 1
    try:
        info = pltpu.get_tpu_info()
        v = getattr(info, "vmem_capacity_bytes", None)
        if v:
            vmem_bytes = int(v)
        for attr in ("num_tensorcores", "tensorcores_per_chip", "num_cores",
                     "core_count"):
            c = getattr(info, attr, None)
            if c:
                num_cores = int(c)
                break
    except Exception:
        pass
    return vmem_bytes, num_cores


def _odefunc_fused_kernel(x_ref, w1_ref, b1_ref, w2_ref, b2_ref, o_ref):
    """out = relu(x @ W1^T + b1) @ W2^T + b2; weights pre-transposed to (in, out)."""
    xb = x_ref[...].astype(w1_ref.dtype)                  # MXU dtype (bf16 default)
    h = jnp.dot(xb, w1_ref[...], preferred_element_type=jnp.float32)
    h = jnp.maximum(h + b1_ref[...], 0.0)                 # bias + ReLU in f32 (VPU)
    y = jnp.dot(h.astype(w2_ref.dtype), w2_ref[...],
                preferred_element_type=jnp.float32)
    o_ref[...] = (y + b2_ref[...]).astype(o_ref.dtype)


def _odefunc_hidden_tiled_kernel(x_ref, w1_ref, b1_ref, w2_ref, b2_ref, o_ref,
                                 acc_ref):
    """Large-D variant: grid axis 1 tiles the hidden dim; f32 VMEM accumulator."""
    hb = pl.program_id(1)

    @pl.when(hb == 0)
    def _():
        acc_ref[...] = jnp.zeros_like(acc_ref)

    xb = x_ref[...].astype(w1_ref.dtype)
    h = jnp.dot(xb, w1_ref[...], preferred_element_type=jnp.float32)
    h = jnp.maximum(h + b1_ref[...], 0.0)
    acc_ref[...] += jnp.dot(h.astype(w2_ref.dtype), w2_ref[...],
                            preferred_element_type=jnp.float32)

    @pl.when(hb == pl.num_programs(1) - 1)
    def _():
        o_ref[...] = (acc_ref[...] + b2_ref[...]).astype(o_ref.dtype)


class ODEFuncPallas:
    """Pallas implementation of ODEFunc.forward(t, x) == Linear->ReLU->Linear.

    All per-call overheads (weight transpose / padding / casting, tile sizing,
    pallas_call construction, jit) are hoisted into __init__.  The hot path
    (__call__) operates on a PADDED state of shape (B_pad, D_pad): pad once
    with pad_state() before the ODE-solver loop, slice once with unpad_state()
    after it.  Zero padding is semantics-preserving (padded hidden columns are
    relu(0) = 0, padded output columns stay 0, padded batch rows never feed
    back into real rows).
    """

    def __init__(self, w1, b1, w2, b2, *, batch, x_dtype=jnp.float32,
                 mxu_dtype=jnp.bfloat16, batch_tile=None):
        D = int(w1.shape[0])
        assert w1.shape == (D, D) and w2.shape == (D, D)
        assert b1.shape == (D,) and b2.shape == (D,)
        self.D = D
        self.B = int(batch)
        self.x_dtype = jnp.dtype(x_dtype)
        self.mxu_dtype = jnp.dtype(mxu_dtype)

        D_pad = _round_up(D, _LANE)
        p = D_pad - D
        self.D_pad = D_pad
        # One-time parameter prep: pad to lane multiples, pre-transpose the
        # PyTorch-layout (out, in) weights to (in, out), cast to the MXU dtype.
        self.w1t = jnp.pad(w1, ((0, p), (0, p))).T.astype(self.mxu_dtype)
        self.w2t = jnp.pad(w2, ((0, p), (0, p))).T.astype(self.mxu_dtype)
        self.b1r = jnp.pad(b1, (0, p)).reshape(1, D_pad).astype(jnp.float32)
        self.b2r = jnp.pad(b2, (0, p)).reshape(1, D_pad).astype(jnp.float32)

        vmem_bytes, num_cores = _tpu_vmem_and_cores()
        budget = int(0.75 * vmem_bytes)             # generation-aware VMEM budget

        x_bytes = self.x_dtype.itemsize
        w_bytes = self.mxu_dtype.itemsize
        B8 = _round_up(self.B, _SUBLANE)

        # Resident weights (constant index_map) need no double-buffering once
        # they are large enough to matter; at D_pad=128 the saving is noise.
        single_buf_w = D_pad >= 256
        w_buf = 1 if single_buf_w else 2
        weight_vmem = w_buf * 2 * (D_pad * D_pad * w_bytes + D_pad * 4)

        self.hidden_tiled = weight_vmem > budget // 2

        if not self.hidden_tiled:
            # ---- fused path: both weights VMEM-resident across the whole grid ----
            per_row = 2 * 2 * D_pad * x_bytes        # x + out tiles, double-buffered
            avail = max(budget - weight_vmem, per_row * _SUBLANE)
            if batch_tile is None:
                TB = min(2048, avail // per_row)
                TB = max(_SUBLANE, (TB // _SUBLANE) * _SUBLANE)
                TB = min(TB, B8)
                # Only split the batch on megacore chips (>= 2 TensorCores).
                if num_cores >= 2 and B8 // TB < 2 and B8 >= 2 * _SUBLANE:
                    TB = max(_SUBLANE, ((B8 // 2) // _SUBLANE) * _SUBLANE)
            else:
                assert batch_tile % _SUBLANE == 0, "batch_tile must be a multiple of 8"
                TB = int(batch_tile)
            B_pad = _round_up(B8, TB)
            footprint = weight_vmem + 2 * 2 * TB * D_pad * x_bytes
            vmem_limit = int(min(footprint + (8 << 20), int(0.9 * vmem_bytes)))

            def wspec(shape, imap):
                if single_buf_w:
                    return pl.BlockSpec(shape, imap, pipeline_mode=pl.Buffered(1))
                return pl.BlockSpec(shape, imap)

            grid = (B_pad // TB,)
            in_specs = [
                pl.BlockSpec((TB, D_pad), lambda i: (i, 0)),   # x tile
                wspec((D_pad, D_pad), lambda i: (0, 0)),       # W1^T (resident)
                wspec((1, D_pad), lambda i: (0, 0)),           # b1
                wspec((D_pad, D_pad), lambda i: (0, 0)),       # W2^T (resident)
                wspec((1, D_pad), lambda i: (0, 0)),           # b2
            ]
            out_specs = pl.BlockSpec((TB, D_pad), lambda i: (i, 0))
            scratch = []
            kernel = _odefunc_fused_kernel
            dims = ("parallel",)
            TH = D_pad
        else:
            # ---- large-D path: tile the hidden dim, f32 accumulator scratch ----
            # TH = largest divisor of D_pad (multiple of 128) whose weight blocks
            # (double-buffered) fit in ~half the budget.
            th_cap = max(_LANE, (budget // 2) // (2 * 2 * D_pad * w_bytes))
            m = D_pad // _LANE
            cap_units = max(1, th_cap // _LANE)
            d_best = 1
            for d in range(1, m + 1):
                if m % d == 0 and d <= cap_units:
                    d_best = d
            TH = d_best * _LANE
            weight_blk_vmem = 2 * 2 * TH * D_pad * w_bytes + 2 * (TH + D_pad) * 4

            per_row = 2 * 2 * D_pad * x_bytes + D_pad * 4   # x+out dbl-buf + acc
            avail = max(budget - weight_blk_vmem, per_row * _SUBLANE)
            if batch_tile is None:
                TB = min(1024, avail // per_row)
                TB = max(_SUBLANE, (TB // _SUBLANE) * _SUBLANE)
                TB = min(TB, B8)
                if num_cores >= 2 and B8 // TB < 2 and B8 >= 2 * _SUBLANE:
                    TB = max(_SUBLANE, ((B8 // 2) // _SUBLANE) * _SUBLANE)
            else:
                assert batch_tile % _SUBLANE == 0, "batch_tile must be a multiple of 8"
                TB = int(batch_tile)
            B_pad = _round_up(B8, TB)
            footprint = (weight_blk_vmem + 2 * 2 * TB * D_pad * x_bytes
                         + TB * D_pad * 4)
            vmem_limit = int(min(footprint + (8 << 20), int(0.9 * vmem_bytes)))

            grid = (B_pad // TB, D_pad // TH)
            in_specs = [
                pl.BlockSpec((TB, D_pad), lambda i, h: (i, 0)),   # x (resident over h)
                pl.BlockSpec((D_pad, TH), lambda i, h: (0, h)),   # W1^T[:, hb]
                pl.BlockSpec((1, TH), lambda i, h: (0, h)),       # b1[hb]
                pl.BlockSpec((TH, D_pad), lambda i, h: (h, 0)),   # W2^T[hb, :]
                pl.BlockSpec((1, D_pad), lambda i, h: (0, 0)),    # b2
            ]
            out_specs = pl.BlockSpec((TB, D_pad), lambda i, h: (i, 0))
            scratch = [pltpu.VMEM((TB, D_pad), jnp.float32)]
            kernel = _odefunc_hidden_tiled_kernel
            dims = ("parallel", "arbitrary")

        self.TB = TB
        self.TH = TH
        self.B_pad = B_pad
        self.vmem_limit = vmem_limit

        pallas_fn = pl.pallas_call(
            kernel,
            out_shape=jax.ShapeDtypeStruct((B_pad, D_pad), self.x_dtype),
            grid_spec=pltpu.PrefetchScalarGridSpec(
                num_scalar_prefetch=0,
                grid=grid,
                in_specs=in_specs,
                out_specs=out_specs,
                scratch_shapes=scratch,
            ),
            compiler_params=pltpu.CompilerParams(
                dimension_semantics=dims,
                vmem_limit_bytes=vmem_limit,
            ),
        )
        # jit caches compilation; parameters are passed as arguments each call.
        self._step = jax.jit(pallas_fn)

    def pad_state(self, x):
        """(B, D) -> (B_pad, D_pad). Call ONCE, before the ODE-solver loop."""
        assert x.shape == (self.B, self.D)
        return jnp.pad(x.astype(self.x_dtype),
                       ((0, self.B_pad - self.B), (0, self.D_pad - self.D)))

    def unpad_state(self, x_pad):
        """(B_pad, D_pad) -> (B, D). Call ONCE, after the solver loop."""
        return x_pad[:self.B, :self.D]

    def __call__(self, t, x_pad):
        """ODEFunc.forward(t, x) on the PADDED state (hot path: no pad/slice)."""
        del t  # unused by the reference module
        assert x_pad.shape == (self.B_pad, self.D_pad)
        return self._step(x_pad, self.w1t, self.b1r, self.w2t, self.b2r)

    def forward(self, t, x):
        """Convenience unpadded in/out (pays pad+slice; avoid inside solver loops)."""
        return self.unpad_state(self(t, self.pad_state(x)))


if __name__ == "__main__":
    key = jax.random.PRNGKey(0)
    # Small demo shape: batch=16, dim=32 (padded to 128 lanes inside the wrapper).
    B, D = 16, 32
    k_x, k_w1, k_b1, k_w2, k_b2 = jax.random.split(key, 5)

    # Deterministic init mimicking nn.Linear default: U(-1/sqrt(in), 1/sqrt(in)).
    bound = 1.0 / (D ** 0.5)
    x = jax.random.normal(k_x, (B, D), dtype=jnp.float32)
    w1 = jax.random.uniform(k_w1, (D, D), jnp.float32, -bound, bound)
    b1 = jax.random.uniform(k_b1, (D,), jnp.float32, -bound, bound)
    w2 = jax.random.uniform(k_w2, (D, D), jnp.float32, -bound, bound)
    b2 = jax.random.uniform(k_b2, (D,), jnp.float32, -bound, bound)
    t = jnp.float32(0.0)  # unused by ODEFunc.forward

    ode = ODEFuncPallas(w1, b1, w2, b2, batch=B)

    # Pad ONCE (outside the per-step hot path), run the kernel, slice ONCE.
    x_pad = ode.pad_state(x)
    y = ode.unpad_state(ode(t, x_pad))
    y = jax.block_until_ready(y)

    # Reference that emulates the kernel's bf16 MXU inputs (f32 accumulation).
    def reference(xr):
        w1q = w1.astype(jnp.bfloat16).astype(jnp.float32)
        w2q = w2.astype(jnp.bfloat16).astype(jnp.float32)
        h = jnp.maximum(
            xr.astype(jnp.bfloat16).astype(jnp.float32) @ w1q.T + b1, 0.0)
        return h.astype(jnp.bfloat16).astype(jnp.float32) @ w2q.T + b2

    y_ref = reference(x)
    assert y.shape == (B, D)
    assert jnp.allclose(y, y_ref, atol=2e-3, rtol=2e-3), "mismatch vs reference"

    # Typical ODE-solver usage: the state stays padded across all steps
    # (no per-step pad/slice HBM passes).
    dt = jnp.float32(0.1)
    state = x_pad
    for _ in range(3):
        state = state + dt * ode(t, state)
    jax.block_until_ready(ode.unpad_state(state))

    print("KERNEL_OK")
</pallas_src>

<mosaic_0001>
module attributes {stable_mosaic.version = 11 : i64} {
  func.func @_odefunc_fused_kernel(%arg0: i32, %arg1: memref<16x128xf32, #tpu.memory_space<vmem>>, %arg2: memref<128x128xbf16, #tpu.memory_space<vmem>>, %arg3: memref<1x128xf32, #tpu.memory_space<vmem>>, %arg4: memref<128x128xbf16, #tpu.memory_space<vmem>>, %arg5: memref<1x128xf32, #tpu.memory_space<vmem>>, %arg6: memref<16x128xf32, #tpu.memory_space<vmem>>) attributes {dimension_semantics = [#tpu.dimension_semantics<parallel>], iteration_bounds = array<i64: 1>, scalar_prefetch = 0 : i64, scratch_operands = 0 : i64, tpu.core_type = #tpu.core_type<tc>, window_params = [{transform_indices = @transform_0, window_bounds = array<i64: 16, 128>}, {pipeline_mode = #tpu.pipeline_mode<synchronous>, transform_indices = @transform_1, window_bounds = array<i64: 128, 128>}, {pipeline_mode = #tpu.pipeline_mode<synchronous>, transform_indices = @transform_2, window_bounds = array<i64: 1, 128>}, {pipeline_mode = #tpu.pipeline_mode<synchronous>, transform_indices = @transform_3, window_bounds = array<i64: 128, 128>}, {pipeline_mode = #tpu.pipeline_mode<synchronous>, transform_indices = @transform_4, window_bounds = array<i64: 1, 128>}, {transform_indices = @transform_5, window_bounds = array<i64: 16, 128>}]} {
    %c0 = arith.constant 0 : index
    %c0_0 = arith.constant 0 : index
    %0 = vector.load %arg1[%c0, %c0_0] : memref<16x128xf32, #tpu.memory_space<vmem>>, vector<16x128xf32>
    %1 = arith.truncf %0 : vector<16x128xf32> to vector<16x128xbf16>
    %c0_1 = arith.constant 0 : index
    %c0_2 = arith.constant 0 : index
    %2 = vector.load %arg2[%c0_1, %c0_2] : memref<128x128xbf16, #tpu.memory_space<vmem>>, vector<128x128xbf16>
    %cst = arith.constant dense<0.000000e+00> : vector<16x128xf32>
    %3 = tpu.matmul %1, %2, %cst {dimension_numbers = #tpu.dot_dimension_numbers<[1], [0], [0], [1], [0, 0, 1, 1], [], []>} : vector<16x128xbf16>, vector<128x128xbf16>, vector<16x128xf32> -> vector<16x128xf32>
    %c0_3 = arith.constant 0 : index
    %c0_4 = arith.constant 0 : index
    %4 = vector.load %arg3[%c0_3, %c0_4] : memref<1x128xf32, #tpu.memory_space<vmem>>, vector<1x128xf32>
    %5 = vector.broadcast %4 : vector<1x128xf32> to vector<16x128xf32>
    %6 = arith.addf %3, %5 : vector<16x128xf32>
    %cst_5 = arith.constant 0.000000e+00 : f32
    %7 = vector.broadcast %cst_5 : f32 to vector<16x128xf32>
    %8 = arith.maximumf %6, %7 : vector<16x128xf32>
    %9 = arith.truncf %8 : vector<16x128xf32> to vector<16x128xbf16>
    %c0_6 = arith.constant 0 : index
    %c0_7 = arith.constant 0 : index
    %10 = vector.load %arg4[%c0_6, %c0_7] : memref<128x128xbf16, #tpu.memory_space<vmem>>, vector<128x128xbf16>
    %cst_8 = arith.constant dense<0.000000e+00> : vector<16x128xf32>
    %11 = tpu.matmul %9, %10, %cst_8 {dimension_numbers = #tpu.dot_dimension_numbers<[1], [0], [0], [1], [0, 0, 1, 1], [], []>} : vector<16x128xbf16>, vector<128x128xbf16>, vector<16x128xf32> -> vector<16x128xf32>
    %c0_9 = arith.constant 0 : index
    %c0_10 = arith.constant 0 : index
    %12 = vector.load %arg5[%c0_9, %c0_10] : memref<1x128xf32, #tpu.memory_space<vmem>>, vector<1x128xf32>
    %13 = vector.broadcast %12 : vector<1x128xf32> to vector<16x128xf32>
    %14 = arith.addf %11, %13 : vector<16x128xf32>
    %c0_11 = arith.constant 0 : index
    %c0_12 = arith.constant 0 : index
    %15 = vector.load %arg6[%c0_11, %c0_12] : memref<16x128xf32, #tpu.memory_space<vmem>>, vector<16x128xf32>
    tpu.vector_store %arg6[%c0_11, %c0_12], %14 {strides = array<i32>} : memref<16x128xf32, #tpu.memory_space<vmem>>, vector<16x128xf32>,
    return
  }
  func.func @transform_0(%arg0: i32) -> (i32, i32) {
    %c0_i32 = arith.constant 0 : i32
    %c0_i32_0 = arith.constant 0 : i32
    return %arg0, %c0_i32 : i32, i32
  }
  func.func @transform_1(%arg0: i32) -> (i32, i32) {
    %c0_i32 = arith.constant 0 : i32
    %c0_i32_0 = arith.constant 0 : i32
    %c0_i32_1 = arith.constant 0 : i32
    return %c0_i32, %c0_i32_0 : i32, i32
  }
  func.func @transform_2(%arg0: i32) -> (i32, i32) {
    %c0_i32 = arith.constant 0 : i32
    %c0_i32_0 = arith.constant 0 : i32
    %c0_i32_1 = arith.constant 0 : i32
    return %c0_i32, %c0_i32_0 : i32, i32
  }
  func.func @transform_3(%arg0: i32) -> (i32, i32) {
    %c0_i32 = arith.constant 0 : i32
    %c0_i32_0 = arith.constant 0 : i32
    %c0_i32_1 = arith.constant 0 : i32
    return %c0_i32, %c0_i32_0 : i32, i32
  }
  func.func @transform_4(%arg0: i32) -> (i32, i32) {
    %c0_i32 = arith.constant 0 : i32
    %c0_i32_0 = arith.constant 0 : i32
    %c0_i32_1 = arith.constant 0 : i32
    return %c0_i32, %c0_i32_0 : i32, i32
  }
  func.func @transform_5(%arg0: i32) -> (i32, i32) {
    %c0_i32 = arith.constant 0 : i32
    %c0_i32_0 = arith.constant 0 : i32
    return %arg0, %c0_i32 : i32, i32
  }
}

</mosaic_0001>

<bundles_post_ra>
// kernel: tpu_custom_call.1
= control target key start
LH: loop header
LB: loop body
LE: loop exit
PB: predicated region body
PF: predicated region fallthrough
CT: control target
= control target key end

     0   :  { %10 = vsyncpa [#allocation3], 0  ;;  %s615_s0 = inlined_call_operand.hbm [shape: f32[16,128], index: 0, kind: input, shape index: {}]   ;;  %s616_s1 = inlined_call_operand.hbm [shape: bf16[128,128], index: 1, kind: input, shape index: {}]   ;;  %s617_s2 = inlined_call_operand.vmem [shape: f32[1,128], index: 2, kind: input, shape index: {}]   ;;  %s618_s3 = inlined_call_operand.hbm [shape: bf16[128,128], index: 3, kind: input, shape index: {}]   ;;  %s619_s4 = inlined_call_operand.vmem [shape: f32[1,128], index: 4, kind: input, shape index: {}]   ;;  %s620_s5 = inlined_call_operand.hbm [shape: f32[16,128], index: 5, kind: output, shape index: {}]  }
   0x1   :  { %11 = vsyncpa [#allocation6], 0 }
   0x2   :  { %12 = vsyncpa [#allocation4], 0  ;;  %s509_s18 = smov [#allocation5]   ;;  %s415_s22 = scalar_lea.hbm %s616_s1, 1024 }
   0x3   :  { %s30_s19 = sshll.u32 %s509_s18, 4  ;;  %p416_p0 = scmp.ne.s32.totalorder %s616_s1, %s415_s22  ;;  %s31_s19 = int_to_ptr.vmem [resolvable:$true] %s30_s19 }
   0x4   :  { %p419_p1 = scmp.lt.u32.totalorder %s415_s22, %s616_s1 }
   0x6   :  { %p421_p2 = pnand %p419_p1, %p416_p0 }
   0x8   :  { %424 = shalt.err (!%p421_p2)
}
   0x9   :  { %s425_s27 = scalar_lea.vmem %s31_s19, 1024  ;;  %p430_p4 = scmp.lt.s32.totalorder %s31_s19, %s31_s19 }
   0xa   :  { %p426_p3 = scmp.ne.s32.totalorder %s31_s19, %s425_s27  ;;  %p431_p5 = scmp.lt.s32.totalorder %s425_s27, %s425_s27 }
   0xc   :  { %p432_p6 = por %p431_p5, %p430_p4 }
   0xe   :  { %p433_p7 = pnand %p432_p6, %p426_p3 }
  0x10   :  { %436 = shalt.err (!%p433_p7)
}
  0x11   :  { %s510_s28 = smov 64   ;;  %s511_s29 = smov 4  }
  0x12   :  { %36 = dma.hbm_to_vmem [thread:$0]  %s616_s1, 1024, %s31_s19, [#allocation6], %s510_s28, %s510_s28, %s511_s29  }
  0x13   :  { %s512_s7 = smov [#allocation2]   ;;  %s437_s11 = scalar_lea.hbm %s615_s0, 256 }
  0x14   :  { %s18_s8 = sshll.u32 %s512_s7, 4  ;;  %p438_p8 = scmp.ne.s32.totalorder %s615_s0, %s437_s11  ;;  %s19_s8 = int_to_ptr.vmem [resolvable:$true] %s18_s8 }
  0x15   :  { %p441_p9 = scmp.lt.u32.totalorder %s437_s11, %s615_s0 }
  0x17   :  { %p443_p10 = pnand %p441_p9, %p438_p8 }
  0x19   :  { %446 = shalt.err (!%p443_p10)
}
  0x1a   :  { %s447_s16 = scalar_lea.vmem %s19_s8, 256  ;;  %p452_p12 = scmp.lt.s32.totalorder %s19_s8, %s19_s8 }
  0x1b   :  { %p448_p11 = scmp.ne.s32.totalorder %s19_s8, %s447_s16  ;;  %p453_p13 = scmp.lt.s32.totalorder %s447_s16, %s447_s16 }
  0x1d   :  { %p454_p0 = por %p453_p13, %p452_p12 }
  0x1f   :  { %p455_p1 = pnand %p454_p0, %p448_p11 }
  0x21   :  { %458 = shalt.err (!%p455_p1)
}
  0x22   :  { %s513_s1 = smov 128   ;;  %s514_s17 = smov 8  }
  0x23   :  { %24 = dma.hbm_to_vmem [thread:$0]  %s615_s0, 256, %s19_s8, [#allocation3], %s513_s1, %s513_s1, %s514_s17  }
  0x24   :  { %s515_s20 = smov [#allocation7]   ;;  %s459_s24 = scalar_lea.hbm %s618_s3, 1024 }
  0x25   :  { %s44_s21 = sshll.u32 %s515_s20, 4  ;;  %p460_p2 = scmp.ne.s32.totalorder %s618_s3, %s459_s24  ;;  %s45_s21 = int_to_ptr.vmem [resolvable:$true] %s44_s21 }
  0x26   :  { %p463_p3 = scmp.lt.u32.totalorder %s459_s24, %s618_s3 }
  0x28   :  { %p465_p4 = pnand %p463_p3, %p460_p2 }
  0x2a   :  { %468 = shalt.err (!%p465_p4)
}
  0x2b   :  { %s469_s6 = scalar_lea.vmem %s45_s21, 1024  ;;  %p474_p6 = scmp.lt.s32.totalorder %s45_s21, %s45_s21 }
  0x2c   :  { %p470_p5 = scmp.ne.s32.totalorder %s45_s21, %s469_s6  ;;  %p475_p7 = scmp.lt.s32.totalorder %s469_s6, %s469_s6 }
  0x2e   :  { %p476_p8 = por %p475_p7, %p474_p6 }
  0x30   :  { %p477_p9 = pnand %p476_p8, %p470_p5 }
  0x32   :  { %480 = shalt.err (!%p477_p9)
}
  0x33   :  { %50 = dma.hbm_to_vmem [thread:$0]  %s618_s3, 1024, %s45_s21, [#allocation6], %s510_s28, %s510_s28, %s511_s29  }
  0x34   :  { %503 = dma.done.wait [#allocation3], 256  }
  0x35   :  { %504 = vsyncadd [#allocation3], 4294967040 }
  0x36   :  { %505 = dma.done.wait [#allocation6], 2048  }
  0x37   :  { %506 = vsyncadd [#allocation6], 4294965248  ;;  %v516_v0 = vmov 0.0   ;;  %vm517_vm0 = vmmov 0   ;;  %v399_v1 = vld [vmem:[#allocation5] sm:$0xff]   ;;  %v400_v2 = vld [vmem:[#allocation5 + $0x8] sm:$0xff]  }
  0x38   :  { %349 = vmatprep.subr.bf16.mxu0 %v516_v0  ;;  %365 = vmatprep.mubr.msk.bf16.mxu0 %vm517_vm0, %v516_v0  ;;  %v401_v3 = vld [vmem:[#allocation5 + $0x10] sm:$0xff]   ;;  %v407_v4 = vld [vmem:[#allocation7] sm:$0xff]   ;;  %v402_v5 = vld [vmem:[#allocation5 + $0x18] sm:$0xff]   ;;  %s518_s9 = smov [#allocation8]  }
  0x39   :  { %369 = vmatprep.subr.bf16.mxu1 %v516_v0  ;;  %385 = vmatprep.mubr.msk.bf16.mxu1 %vm517_vm0, %v516_v0  ;;  %v408_v6 = vld [vmem:[#allocation7 + $0x8] sm:$0xff]   ;;  %v403_v7 = vld [vmem:[#allocation5 + $0x20] sm:$0xff]   ;;  %v409_v8 = vld [vmem:[#allocation7 + $0x10] sm:$0xff]   ;;  %s300_s10 = sshll.u32 %s518_s9, 4  ;;  %s301_s10 = int_to_ptr.vmem [resolvable:$true] %s300_s10 }
  0x3a   :  { %350 = vmatpush3.bf16.msra.mxu0 %v399_v1  ;;  %370 = vmatpush3.bf16.msra.mxu1 %v407_v4  ;;  %v404_v9 = vld [vmem:[#allocation5 + $0x28] sm:$0xff]   ;;  %v410_v10 = vld [vmem:[#allocation7 + $0x18] sm:$0xff]   ;;  %v405_v11 = vld [vmem:[#allocation5 + $0x30] sm:$0xff]   ;;  %p486_p11 = scmp.lt.s32.totalorder %s301_s10, %s301_s10 }
  0x3b   :  { %351 = vmatprep.subr.bf16.mxu0 %v516_v0  ;;  %371 = vmatprep.subr.bf16.mxu1 %v516_v0  ;;  %v411_v12 = vld [vmem:[#allocation7 + $0x20] sm:$0xff]   ;;  %v406_v13 = vld [vmem:[#allocation5 + $0x38] sm:$0xff]   ;;  %v63_v14 = vld [vmem:[#allocation2] sm:$0xff] }
  0x3c   :  { %v64_v15 = vld [vmem:[#allocation2 + $0x8] sm:$0xff]  ;;  %v412_v16 = vld [vmem:[#allocation7 + $0x28] sm:$0xff]   ;;  %v413_v18 = vld [vmem:[#allocation7 + $0x30] sm:$0xff]  }
  0x3d   :  { %v65_v17 = vpack.c.bf16 %v64_v15, %v63_v14  ;;  %v414_v19 = vld [vmem:[#allocation7 + $0x38] sm:$0xff]   ;;  %v313_v20 = vld [vmem:[%s617_s2] ss:$0 sm:$0xff]  ;;  %s481_s2 = scalar_lea.vmem %s301_s10, 256 }
  0x3e   :  { %352 = vmatpush3.bf16.msra.mxu0 %v400_v2  ;;  %372 = vmatpush3.bf16.msra.mxu1 %v408_v6  ;;  %v322_v30 = vld [vmem:[%s619_s4] ss:$0 sm:$0xff]  ;;  %p482_p10 = scmp.ne.s32.totalorder %s301_s10, %s481_s2  ;;  %p487_p12 = scmp.lt.s32.totalorder %s481_s2, %s481_s2 }
  0x3f   :  { %353 = vmatprep.subr.bf16.mxu0 %v516_v0  ;;  %373 = vmatprep.subr.bf16.mxu1 %v516_v0 }
  0x40   :  { %p488_p13 = por %p487_p12, %p486_p11 }
  0x42   :  { %354 = vmatpush3.bf16.msra.mxu0 %v401_v3  ;;  %374 = vmatpush3.bf16.msra.mxu1 %v409_v8  ;;  %p489_p0 = pnand %p488_p13, %p482_p10 }
  0x43   :  { %355 = vmatprep.subr.bf16.mxu0 %v516_v0  ;;  %375 = vmatprep.subr.bf16.mxu1 %v516_v0 }
  0x46   :  { %356 = vmatpush3.bf16.msra.mxu0 %v402_v5  ;;  %376 = vmatpush3.bf16.msra.mxu1 %v410_v10 }
  0x47   :  { %357 = vmatprep.subr.bf16.mxu0 %v516_v0  ;;  %377 = vmatprep.subr.bf16.mxu1 %v516_v0 }
  0x4a   :  { %358 = vmatpush3.bf16.msra.mxu0 %v403_v7  ;;  %378 = vmatpush3.bf16.msra.mxu1 %v411_v12 }
  0x4b   :  { %359 = vmatprep.subr.bf16.mxu0 %v516_v0  ;;  %379 = vmatprep.subr.bf16.mxu1 %v516_v0 }
  0x4e   :  { %360 = vmatpush3.bf16.msra.mxu0 %v404_v9  ;;  %380 = vmatpush3.bf16.msra.mxu1 %v412_v16 }
  0x4f   :  { %361 = vmatprep.subr.bf16.mxu0 %v516_v0  ;;  %381 = vmatprep.subr.bf16.mxu1 %v516_v0 }
  0x52   :  { %362 = vmatpush3.bf16.msra.mxu0 %v405_v11  ;;  %382 = vmatpush3.bf16.msra.mxu1 %v413_v18 }
  0x53   :  { %363 = vmatprep.subr.bf16.mxu0 %v516_v0  ;;  %383 = vmatprep.subr.bf16.mxu1 %v516_v0 }
  0x56   :  { %364 = vmatpush3.bf16.msra.mxu0 %v406_v13  ;;  %384 = vmatpush3.bf16.msra.mxu1 %v414_v19 }
  0x59   :  { %366 = vmatmul.mubr.bf16.vlgmr.msra.gmra.mrb[0].mxu0 %v65_v17 }
 0x12c   :  { %v171_v21 = vpop.f32.mrb[0].mxu0 }
 0x12d   :  { %v172_v22 = vadd.f32 %v313_v20, %v171_v21  ;;  %v367_v23 = vpop.f32.mrb[1].mxu0 }
 0x12e   :  { %v174_v24 = vpop.f32.mrb[2].mxu0 }
 0x12f   :  { %v175_v25 = vadd.f32 %v313_v20, %v174_v24  ;;  %v368_v26 = vpop.f32.mrb[3].mxu0  ;;  %v178_v27 = vmax.f32 %v172_v22, 0.0 }
 0x131   :  { %v179_v28 = vmax.f32 %v175_v25, 0.0 }
 0x133   :  { %v180_v29 = vpack.c.bf16 %v179_v28, %v178_v27 }
 0x135   :  { %386 = vmatmul.mubr.bf16.vlgmr.msra.gmra.mrb[0].mxu1 %v180_v29 }
 0x208   :  { %v286_v31 = vpop.f32.mrb[0].mxu1 }
 0x209   :  { %v287_v32 = vadd.f32 %v322_v30, %v286_v31  ;;  %v387_v33 = vpop.f32.mrb[1].mxu1 }
 0x20a   :  { %v289_v34 = vpop.f32.mrb[2].mxu1 }
 0x20b   :  { %293 = vst [vmem:[#allocation8] sm:$0xff] %v287_v32  ;;  %v290_v35 = vadd.f32 %v322_v30, %v289_v34  ;;  %v388_v36 = vpop.f32.mrb[3].mxu1 }
 0x20d   :  { %294 = vst [vmem:[#allocation8 + $0x8] sm:$0xff] %v290_v35 }
 0x20e   :  { %492 = shalt.err (!%p489_p0)
}
 0x20f   :  { %s493_s12 = scalar_lea.hbm %s620_s5, 256 }
 0x210   :  { %p494_p1 = scmp.ne.s32.totalorder %s620_s5, %s493_s12  ;;  %p497_p2 = scmp.lt.u32.totalorder %s493_s12, %s620_s5 }
 0x212   :  { %p499_p3 = pnand %p497_p2, %p494_p1 }
 0x214   :  { %502 = shalt.err (!%p499_p3)
}
 0x215   :  { %306 = dma.vmem_to_hbm [thread:$0]  %s301_s10, 256, %s620_s5, [#allocation4], %s513_s1, %s513_s1, %s514_s17  }
 0x216   :  { %507 = dma.done.wait [#allocation4], 256  }
 0x217   :  { %508 = vsyncadd [#allocation4], 4294967040 }
 0x218   :  { %310 = vsyncpa [#allocation3], 1 }
 0x219   :  { %311 = vsyncpa [#allocation6], 1 }
 0x21a   :  { %312 = vsyncpa [#allocation4], 1 }

</bundles_post_ra>
